<compile_context>
chip_gen: v7x
topology: tpu7x:2x2x1
jax: 0.10.0
libtpu: 0.0.40
codegen_flags: <defaults>
</compile_context>

<pallas_src>
import functools
import math

import jax
import jax.numpy as jnp
from jax.experimental import pallas as pl
from jax.experimental.pallas import tpu as pltpu

_LANES = 128
_SUBLANES = 8
_MAX_ROW_TILE = 64      # keeps lane-wide partials comfortably inside 64 vregs
_MAX_COL_TILE = 4096    # 1 MiB/buffer f32 -> 4 MiB double-buffered inputs
                        # (fits v5e 16 MiB / v6e 32 MiB / v7x 32 MiB scoped VMEM)


def _round_up(n, m):
    return ((n + m - 1) // m) * m


def _soft_dice_kernel(x_ref, y_ref, dc_ref, acc_xy_ref, acc_s_ref, *,
                      smooth, lane_chunks):
    # x_ref / y_ref: (TR, TC) VMEM tiles; dc_ref: (TR, 1) per-row dice coeff.
    col = pl.program_id(1)

    @pl.when(col == 0)
    def _init():
        acc_xy_ref[...] = jnp.zeros_like(acc_xy_ref)
        acc_s_ref[...] = jnp.zeros_like(acc_s_ref)

    tr = acc_xy_ref.shape[0]
    # Lane-wide partial sums for this tile: hot path is pure VPU work
    # (1 mul + 3 adds per 128-lane chunk), no cross-lane reduce here.
    pxy = jnp.zeros((tr, _LANES), jnp.float32)
    ps = jnp.zeros((tr, _LANES), jnp.float32)
    for k in range(lane_chunks):
        xs = x_ref[:, k * _LANES:(k + 1) * _LANES].astype(jnp.float32)
        ys = y_ref[:, k * _LANES:(k + 1) * _LANES].astype(jnp.float32)
        pxy = pxy + xs * ys          # -> sum(x*y)
        ps = ps + (xs + ys)          # -> sum(x) + sum(y) == 2*tp + fp + fn
    acc_xy_ref[...] += pxy
    acc_s_ref[...] += ps

    @pl.when(col == pl.num_programs(1) - 1)
    def _finalize():
        # Cross-lane (XLU) reduce only once per row-block, in the epilogue.
        sxy = jnp.sum(acc_xy_ref[...], axis=-1, keepdims=True)   # (TR, 1)
        ssum = jnp.sum(acc_s_ref[...], axis=-1, keepdims=True)   # (TR, 1)
        dc_ref[...] = (2.0 * sxy + smooth) / (ssum + smooth)


def soft_dice_loss(x, y, smooth=1.0):
    """Pallas implementation of SoftDiceLoss(smooth, dims=(-2, -1)).forward."""
    assert x.shape == y.shape
    *lead, h, w = x.shape
    rows = int(math.prod(lead)) if lead else 1
    cols = h * w

    # Stream inputs in their native dtype; upcast to f32 inside the kernel.
    x2 = x.reshape(rows, cols)
    y2 = y.reshape(rows, cols)

    tr = min(_round_up(rows, _SUBLANES), _MAX_ROW_TILE)
    tc = min(_round_up(cols, _LANES), _MAX_COL_TILE)
    rows_p = _round_up(rows, tr)
    cols_p = _round_up(cols, tc)

    if (rows_p, cols_p) != (rows, cols):
        pad = ((0, rows_p - rows), (0, cols_p - cols))
        x2 = jnp.pad(x2, pad)   # zero padding: contributes 0 to both sums
        y2 = jnp.pad(y2, pad)

    lane_chunks = tc // _LANES
    # NOTE: smooth is baked in as a Python constant -> changing it recompiles.
    kernel = functools.partial(_soft_dice_kernel, smooth=float(smooth),
                               lane_chunks=lane_chunks)

    grid = (rows_p // tr, cols_p // tc)

    dc = pl.pallas_call(
        kernel,
        out_shape=jax.ShapeDtypeStruct((rows_p, 1), jnp.float32),
        grid_spec=pltpu.PrefetchScalarGridSpec(
            num_scalar_prefetch=0,
            grid=grid,
            in_specs=[
                pl.BlockSpec((tr, tc), lambda r, c: (r, c)),
                pl.BlockSpec((tr, tc), lambda r, c: (r, c)),
            ],
            out_specs=pl.BlockSpec((tr, 1), lambda r, c: (r, 0)),
            scratch_shapes=[
                pltpu.VMEM((tr, _LANES), jnp.float32),   # acc sum(x*y)
                pltpu.VMEM((tr, _LANES), jnp.float32),   # acc sum(x+y)
            ],
        ),
        compiler_params=pltpu.CompilerParams(
            dimension_semantics=("parallel", "arbitrary"),
            vmem_limit_bytes=32 * 1024 * 1024,
        ),
    )(x2, y2)

    # Drop padded rows, then mean / 1 - mean in the wrapper.
    return 1.0 - jnp.mean(dc[:rows, 0])


def _soft_dice_ref(x, y, smooth=1.0):
    # Pure-JAX reference mirroring the PyTorch module exactly.
    tp = jnp.sum(x * y, axis=(-2, -1))
    fp = jnp.sum(x * (1 - y), axis=(-2, -1))
    fn = jnp.sum((1 - x) * y, axis=(-2, -1))
    dc = (2 * tp + smooth) / (2 * tp + fp + fn + smooth)
    return 1.0 - jnp.mean(dc)


if __name__ == "__main__":
    key = jax.random.PRNGKey(0)
    kx, ky = jax.random.split(key)

    # x: soft predictions in [0, 1]; y: binary targets. NCHW layout.
    B, C, H, W = 2, 4, 16, 16
    x = jax.random.uniform(kx, (B, C, H, W), dtype=jnp.float32)
    y = (jax.random.uniform(ky, (B, C, H, W), dtype=jnp.float32) > 0.5).astype(
        jnp.float32
    )

    loss = jax.block_until_ready(soft_dice_loss(x, y, smooth=1.0))
    ref = _soft_dice_ref(x, y, smooth=1.0)
    assert jnp.allclose(loss, ref, atol=1e-5, rtol=1e-5), (loss, ref)

    # Second (still small) check exercising row/col padding + multiple
    # column tiles of the streaming reduction path.
    kx2, ky2 = jax.random.split(ky)
    B2, C2, H2, W2 = 2, 3, 72, 72
    x_big = jax.random.uniform(kx2, (B2, C2, H2, W2), dtype=jnp.float32)
    y_big = (jax.random.uniform(ky2, (B2, C2, H2, W2)) > 0.5).astype(jnp.float32)
    loss2 = jax.block_until_ready(soft_dice_loss(x_big, y_big, smooth=1.0))
    ref2 = _soft_dice_ref(x_big, y_big, smooth=1.0)
    assert jnp.allclose(loss2, ref2, atol=1e-5, rtol=1e-5), (loss2, ref2)

    print("KERNEL_OK")
</pallas_src>

<mosaic_0001>
module attributes {stable_mosaic.version = 11 : i64} {
  func.func @_soft_dice_kernel(%arg0: i32, %arg1: i32, %arg2: memref<8x256xf32, #tpu.memory_space<vmem>>, %arg3: memref<8x256xf32, #tpu.memory_space<vmem>>, %arg4: memref<8x1xf32, #tpu.memory_space<vmem>>, %arg5: memref<8x128xf32, #tpu.memory_space<vmem>>, %arg6: memref<8x128xf32, #tpu.memory_space<vmem>>) attributes {dimension_semantics = [#tpu.dimension_semantics<parallel>, #tpu.dimension_semantics<arbitrary>], iteration_bounds = array<i64: 1, 1>, scalar_prefetch = 0 : i64, scratch_operands = 2 : i64, tpu.core_type = #tpu.core_type<tc>, window_params = [{transform_indices = @transform_0, window_bounds = array<i64: 8, 256>}, {transform_indices = @transform_1, window_bounds = array<i64: 8, 256>}, {transform_indices = @transform_2, window_bounds = array<i64: 8, 1>}]} {
    %c0_i32 = arith.constant 0 : i32
    %0 = arith.cmpi eq, %arg1, %c0_i32 : i32
    %1 = arith.extui %0 : i1 to i32
    %c0_i32_0 = arith.constant 0 : i32
    %2 = arith.cmpi ne, %1, %c0_i32_0 : i32
    scf.if %2 {
      %cst_18 = arith.constant 0.000000e+00 : f32
      %26 = vector.broadcast %cst_18 : f32 to vector<8x128xf32>
      %c0_19 = arith.constant 0 : index
      %c0_20 = arith.constant 0 : index
      %27 = vector.load %arg5[%c0_19, %c0_20] : memref<8x128xf32, #tpu.memory_space<vmem>>, vector<8x128xf32>
      tpu.vector_store %arg5[%c0_19, %c0_20], %26 {strides = array<i32>} : memref<8x128xf32, #tpu.memory_space<vmem>>, vector<8x128xf32>,
      %cst_21 = arith.constant 0.000000e+00 : f32
      %28 = vector.broadcast %cst_21 : f32 to vector<8x128xf32>
      %c0_22 = arith.constant 0 : index
      %c0_23 = arith.constant 0 : index
      %29 = vector.load %arg6[%c0_22, %c0_23] : memref<8x128xf32, #tpu.memory_space<vmem>>, vector<8x128xf32>
      tpu.vector_store %arg6[%c0_22, %c0_23], %28 {strides = array<i32>} : memref<8x128xf32, #tpu.memory_space<vmem>>, vector<8x128xf32>,
    } else {
    }
    %cst = arith.constant 0.000000e+00 : f32
    %3 = vector.broadcast %cst : f32 to vector<8x128xf32>
    %cst_1 = arith.constant 0.000000e+00 : f32
    %4 = vector.broadcast %cst_1 : f32 to vector<8x128xf32>
    %c0 = arith.constant 0 : index
    %c0_2 = arith.constant 0 : index
    %5 = vector.load %arg2[%c0, %c0_2] : memref<8x256xf32, #tpu.memory_space<vmem>>, vector<8x128xf32>
    %c0_3 = arith.constant 0 : index
    %c0_4 = arith.constant 0 : index
    %6 = vector.load %arg3[%c0_3, %c0_4] : memref<8x256xf32, #tpu.memory_space<vmem>>, vector<8x128xf32>
    %7 = arith.mulf %5, %6 : vector<8x128xf32>
    %8 = arith.addf %3, %7 : vector<8x128xf32>
    %9 = arith.addf %5, %6 : vector<8x128xf32>
    %10 = arith.addf %4, %9 : vector<8x128xf32>
    %c0_5 = arith.constant 0 : index
    %c128 = arith.constant 128 : index
    %11 = vector.load %arg2[%c0_5, %c128] : memref<8x256xf32, #tpu.memory_space<vmem>>, vector<8x128xf32>
    %c0_6 = arith.constant 0 : index
    %c128_7 = arith.constant 128 : index
    %12 = vector.load %arg3[%c0_6, %c128_7] : memref<8x256xf32, #tpu.memory_space<vmem>>, vector<8x128xf32>
    %13 = arith.mulf %11, %12 : vector<8x128xf32>
    %14 = arith.addf %8, %13 : vector<8x128xf32>
    %15 = arith.addf %11, %12 : vector<8x128xf32>
    %16 = arith.addf %10, %15 : vector<8x128xf32>
    %c0_8 = arith.constant 0 : index
    %c0_9 = arith.constant 0 : index
    %17 = vector.load %arg5[%c0_8, %c0_9] : memref<8x128xf32, #tpu.memory_space<vmem>>, vector<8x128xf32>
    %18 = arith.addf %17, %14 : vector<8x128xf32>
    %c0_10 = arith.constant 0 : index
    %c0_11 = arith.constant 0 : index
    %19 = vector.load %arg5[%c0_10, %c0_11] : memref<8x128xf32, #tpu.memory_space<vmem>>, vector<8x128xf32>
    tpu.vector_store %arg5[%c0_10, %c0_11], %18 {strides = array<i32>} : memref<8x128xf32, #tpu.memory_space<vmem>>, vector<8x128xf32>,
    %c0_12 = arith.constant 0 : index
    %c0_13 = arith.constant 0 : index
    %20 = vector.load %arg6[%c0_12, %c0_13] : memref<8x128xf32, #tpu.memory_space<vmem>>, vector<8x128xf32>
    %21 = arith.addf %20, %16 : vector<8x128xf32>
    %c0_14 = arith.constant 0 : index
    %c0_15 = arith.constant 0 : index
    %22 = vector.load %arg6[%c0_14, %c0_15] : memref<8x128xf32, #tpu.memory_space<vmem>>, vector<8x128xf32>
    tpu.vector_store %arg6[%c0_14, %c0_15], %21 {strides = array<i32>} : memref<8x128xf32, #tpu.memory_space<vmem>>, vector<8x128xf32>,
    %c0_i32_16 = arith.constant 0 : i32
    %23 = arith.cmpi eq, %arg1, %c0_i32_16 : i32
    %24 = arith.extui %23 : i1 to i32
    %c0_i32_17 = arith.constant 0 : i32
    %25 = arith.cmpi ne, %24, %c0_i32_17 : i32
    scf.if %25 {
      %c0_18 = arith.constant 0 : index
      %c0_19 = arith.constant 0 : index
      %26 = vector.load %arg5[%c0_18, %c0_19] : memref<8x128xf32, #tpu.memory_space<vmem>>, vector<8x128xf32>
      %cst_20 = arith.constant dense<0.000000e+00> : vector<8xf32>
      %27 = vector.multi_reduction <add>, %26, %cst_20 [1] : vector<8x128xf32> to vector<8xf32>
      %28 = vector.shape_cast %27 : vector<8xf32> to vector<8x1xf32>
      %c0_21 = arith.constant 0 : index
      %c0_22 = arith.constant 0 : index
      %29 = vector.load %arg6[%c0_21, %c0_22] : memref<8x128xf32, #tpu.memory_space<vmem>>, vector<8x128xf32>
      %cst_23 = arith.constant dense<0.000000e+00> : vector<8xf32>
      %30 = vector.multi_reduction <add>, %29, %cst_23 [1] : vector<8x128xf32> to vector<8xf32>
      %31 = vector.shape_cast %30 : vector<8xf32> to vector<8x1xf32>
      %cst_24 = arith.constant 2.000000e+00 : f32
      %32 = vector.broadcast %cst_24 : f32 to vector<8x1xf32>
      %33 = arith.mulf %32, %28 : vector<8x1xf32>
      %cst_25 = arith.constant 1.000000e+00 : f32
      %34 = vector.broadcast %cst_25 : f32 to vector<8x1xf32>
      %35 = arith.addf %33, %34 : vector<8x1xf32>
      %cst_26 = arith.constant 1.000000e+00 : f32
      %36 = vector.broadcast %cst_26 : f32 to vector<8x1xf32>
      %37 = arith.addf %31, %36 : vector<8x1xf32>
      %38 = arith.divf %35, %37 : vector<8x1xf32>
      %c0_27 = arith.constant 0 : index
      %c0_28 = arith.constant 0 : index
      %39 = vector.load %arg4[%c0_27, %c0_28] : memref<8x1xf32, #tpu.memory_space<vmem>>, vector<8x1xf32>
      tpu.vector_store %arg4[%c0_27, %c0_28], %38 {strides = array<i32>} : memref<8x1xf32, #tpu.memory_space<vmem>>, vector<8x1xf32>,
    } else {
    }
    return
  }
  func.func @transform_0(%arg0: i32, %arg1: i32) -> (i32, i32) {
    %c0_i32 = arith.constant 0 : i32
    return %arg0, %arg1 : i32, i32
  }
  func.func @transform_1(%arg0: i32, %arg1: i32) -> (i32, i32) {
    %c0_i32 = arith.constant 0 : i32
    return %arg0, %arg1 : i32, i32
  }
  func.func @transform_2(%arg0: i32, %arg1: i32) -> (i32, i32) {
    %c0_i32 = arith.constant 0 : i32
    %c0_i32_0 = arith.constant 0 : i32
    return %arg0, %c0_i32 : i32, i32
  }
}

</mosaic_0001>

<bundles_post_ra>
// kernel: tpu_custom_call.1
= control target key start
LH: loop header
LB: loop body
LE: loop exit
PB: predicated region body
PF: predicated region fallthrough
CT: control target
= control target key end

     0   :  { %7 = vsyncpa [#allocation5], 0  ;;  %s177_s0 = inlined_call_operand.hbm [shape: f32[8,256], index: 0, kind: input, shape index: {}]   ;;  %s178_s1 = inlined_call_operand.hbm [shape: f32[8,256], index: 1, kind: input, shape index: {}]   ;;  %s179_s2 = inlined_call_operand.vmem [shape: f32[8,1], index: 2, kind: output, shape index: {}]  }
   0x1   :  { %8 = vsyncpa [#allocation7], 0  ;;  %s133_s9 = smov [#allocation4]   ;;  %s134_s11 = smov [#allocation6]  }
   0x2   :  { %s15_s10 = sshll.u32 %s133_s9, 4  ;;  %s25_s12 = sshll.u32 %s134_s11, 4  ;;  %s16_s10 = int_to_ptr.vmem [resolvable:$true] %s15_s10  ;;  %s26_s12 = int_to_ptr.vmem [resolvable:$true] %s25_s12 }
   0x3   :  { %s85_s15 = scalar_lea.hbm %s177_s0, 256 }
   0x4   :  { %p86_p0 = scmp.ne.s32.totalorder %s177_s0, %s85_s15  ;;  %p89_p1 = scmp.lt.u32.totalorder %s85_s15, %s177_s0 }
   0x6   :  { %p91_p2 = pnand %p89_p1, %p86_p0 }
   0x8   :  { %94 = shalt.err (!%p91_p2)
}
   0x9   :  { %s95_s20 = scalar_lea.vmem %s16_s10, 256  ;;  %p100_p4 = scmp.lt.s32.totalorder %s16_s10, %s16_s10 }
   0xa   :  { %p96_p3 = scmp.ne.s32.totalorder %s16_s10, %s95_s20  ;;  %p101_p5 = scmp.lt.s32.totalorder %s95_s20, %s95_s20 }
   0xc   :  { %p102_p6 = por %p101_p5, %p100_p4 }
   0xe   :  { %p103_p7 = pnand %p102_p6, %p96_p3 }
  0x10   :  { %106 = shalt.err (!%p103_p7)
}
  0x11   :  { %18 = dma.hbm_to_vmem [thread:$0]  %s177_s0, 256, %s16_s10, [#allocation5]  }
  0x12   :  { %s107_s25 = scalar_lea.hbm %s178_s1, 256 }
  0x13   :  { %p108_p8 = scmp.ne.s32.totalorder %s178_s1, %s107_s25  ;;  %p111_p9 = scmp.lt.u32.totalorder %s107_s25, %s178_s1 }
  0x15   :  { %p113_p10 = pnand %p111_p9, %p108_p8 }
  0x17   :  { %116 = shalt.err (!%p113_p10)
}
  0x18   :  { %s117_s30 = scalar_lea.vmem %s26_s12, 256  ;;  %p122_p12 = scmp.lt.s32.totalorder %s26_s12, %s26_s12 }
  0x19   :  { %p118_p11 = scmp.ne.s32.totalorder %s26_s12, %s117_s30  ;;  %p123_p13 = scmp.lt.s32.totalorder %s117_s30, %s117_s30 }
  0x1b   :  { %p124_p0 = por %p123_p13, %p122_p12 }
  0x1d   :  { %p125_p1 = pnand %p124_p0, %p118_p11 }
  0x1f   :  { %128 = shalt.err (!%p125_p1)
}
  0x20   :  { %28 = dma.hbm_to_vmem [thread:$0]  %s178_s1, 256, %s26_s12, [#allocation7]  }
  0x21   :  { %129 = dma.done.wait [#allocation5], 256  }
  0x22   :  { %130 = vsyncadd [#allocation5], 4294967040 }
  0x23   :  { %131 = dma.done.wait [#allocation7], 256  }
  0x24   :  { %132 = vsyncadd [#allocation7], 4294967040  ;;  %v41_v0 = vld [vmem:[#allocation4] sm:$0xff]  ;;  %v42_v1 = vld [vmem:[#allocation6] sm:$0xff]  ;;  %vm73_vm0 = vcmask 7168  }
  0x25   :  { %v47_v2 = vld [vmem:[#allocation4 + $0x8] sm:$0xff]  ;;  %v45_v3 = vadd.f32 %v42_v1, %v41_v0  ;;  %v48_v4 = vld [vmem:[#allocation6 + $0x8] sm:$0xff]  ;;  %v43_v6 = vmul.f32 %v42_v1, %v41_v0 }
  0x26   :  { %v51_v5 = vadd.f32 %v48_v4, %v47_v2  ;;  %v49_v7 = vmul.f32 %v48_v4, %v47_v2 }
  0x28   :  { %v52_v8 = vadd.f32 %v51_v5, %v45_v3  ;;  %v50_v9 = vadd.f32 %v49_v7, %v43_v6 }
  0x2a   :  { %66 = vadd.xlane.f32.xlu0 %v52_v8 }
  0x2e   :  { %63 = vadd.xlane.f32.xlu0 %v50_v9 }
  0xb7   :  { %v67_v10 = vpop.xlane.xlu0 %66 }
  0xb8   :  { %v70_v11 = vadd.f32 1.0, %v67_v10 }
  0xba   :  { %83 = vrcp.f32 %v70_v11 }
  0xbb   :  { %v64_v12 = vpop.xlane.xlu0 %63 }
  0xbc   :  { %v68_v13 = vmul.f32 2.0, %v64_v12 }
  0xbe   :  { %v69_v14 = vadd.f32 1.0, %v68_v13 }
  0xc4   :  { %v84_v15 = vpop.eup %83 }
  0xc5   :  { %v72_v16 = vmul.f32 %v84_v15, %v69_v14 }
  0xc7   :  { %74 = vst.msk [vmem:[%s179_s2] sm:$0xff] %vm73_vm0, %v72_v16 }
  0xc8   :  { %79 = vsyncpa [#allocation5], 1 }
  0xc9   :  { %80 = vsyncpa [#allocation7], 1 }

</bundles_post_ra>
